<compile_context>
chip_gen: v7x
topology: tpu7x:2x2x1
jax: 0.10.0
libtpu: 0.0.40
codegen_flags: <defaults>
</compile_context>

<pallas_src>
import functools
import math

import jax
import jax.numpy as jnp
import numpy as np
from jax import lax
from jax.experimental import pallas as pl
from jax.experimental.pallas import tpu as pltpu

_PI = math.pi
_PI_2 = math.pi / 2.0

_DFT_MATMUL_MAX_N = 1024   # use the fused DFT-matmul path when H*W <= this
_TINY = 1e-37              # smallest-normal guard for reciprocal / rsqrt
_VMEM_LIMIT = 48 * 1024 * 1024


# ----------------------------------------------------------------------------
# Elementwise math (VPU/EUP friendly).
# ----------------------------------------------------------------------------
def _atan_unit(t):
    """arctan(t) for t in [0, 1] (Sleef atanf minimax polynomial, ~1 ulp f32)."""
    s = t * t
    u = 0.00282363896258175373077393
    u = u * s - 0.0159569028764963150024414
    u = u * s + 0.0425049886107444763183594
    u = u * s - 0.0748900920152664184570312
    u = u * s + 0.106347933411598205566406
    u = u * s - 0.142027363181114196777344
    u = u * s + 0.199926957488059997558594
    u = u * s - 0.333331018686294555664062
    return t + t * (s * u)


def _atan2(y, x):
    """Full-quadrant atan2(y, x) with a single (approximate) reciprocal.

    min/max range reduction -> one polynomial on [0, 1] -> quadrant fixup.
    Known (acceptable) deviations for FFT-of-finite-input data:
      * atan2(-0.0, x<0) returns +pi (sign of zero ignored).
      * +/-inf inputs are unguarded.
    """
    ay = jnp.abs(y)
    ax = jnp.abs(x)
    mx = jnp.maximum(ax, ay)
    mn = jnp.minimum(ax, ay)
    mx_safe = jnp.where(mx < _TINY, 1.0, mx)
    inv = pl.reciprocal(mx_safe, approx=True)
    inv = inv * (2.0 - mx_safe * inv)          # one Newton step -> ~f32 accurate
    p = _atan_unit(mn * inv)                   # atan(min/max) in [0, pi/4]
    p = jnp.where(ay > ax, _PI_2 - p, p)
    p = jnp.where(x < 0.0, _PI - p, p)
    return jnp.where(y < 0.0, -p, p)


def _magnitude(re, im):
    """sqrt(re^2 + im^2) as s * rsqrt(s): shares s, one EUP op, zero-guarded.

    (Not hypot-scaled; fine for the value ranges an FFT of bounded inputs
    produces in f32.)"""
    s = re * re + im * im
    s_safe = jnp.where(s < _TINY, 1.0, s)
    return jnp.where(s < _TINY, 0.0, s * lax.rsqrt(s_safe))


# ----------------------------------------------------------------------------
# Tiling helper: 2-D (rows = B*C, lanes = N) blocks.
# ----------------------------------------------------------------------------
def _pick_tiles(R, N, lane_target=512):
    """Row tile: full extent or a multiple of 8.  Lane tile: full extent (if
    <=128) or a multiple of 128, chosen so the grid has >= 2 steps (megacore /
    pipelining) and per-block size stays well under VMEM on every generation."""
    RT = R if R <= 256 else 256
    if N <= 128:
        NT = N
    else:
        NT = min(lane_target, N)
        NT = max(128, (NT // 128) * 128)
        if pl.cdiv(R, RT) * pl.cdiv(N, NT) < 2:
            NT = max(128, ((pl.cdiv(N, 2) + 127) // 128) * 128)
    return RT, NT


# ----------------------------------------------------------------------------
# Fused DFT (matmul) + magnitude + phase + concat kernel (small H*W).
# ----------------------------------------------------------------------------
def _dft_magphase_kernel(x_ref, dre_ref, dim_ref, out_ref):
    x = x_ref[...]                                               # (RT, N)
    re = jnp.dot(x, dre_ref[...], preferred_element_type=jnp.float32)  # (RT, NT)
    im = jnp.dot(x, dim_ref[...], preferred_element_type=jnp.float32)
    out_ref[0] = _magnitude(re, im)        # magnitude -> channel block [0:C)
    out_ref[1] = _atan2(im, re)            # phase     -> channel block [C:2C)


def _dft_magphase_call(x_flat, dre, dim):
    """x_flat: (B*C, N) f32; dre/dim: (N, N) f32 2-D DFT matrices.
    Returns (2, B*C, N) f32 stacked (magnitude, phase) of the 2-D DFT."""
    R, N = x_flat.shape
    RT, NT = _pick_tiles(R, N)
    grid = (pl.cdiv(R, RT), pl.cdiv(N, NT))
    return pl.pallas_call(
        _dft_magphase_kernel,
        grid=grid,
        in_specs=[
            pl.BlockSpec((RT, N), lambda r, t: (r, 0)),   # x rows, full K
            pl.BlockSpec((N, NT), lambda r, t: (0, t)),   # cos DFT matrix cols
            pl.BlockSpec((N, NT), lambda r, t: (0, t)),   # sin DFT matrix cols
        ],
        out_specs=pl.BlockSpec((2, RT, NT), lambda r, t: (0, r, t)),
        out_shape=jax.ShapeDtypeStruct((2, R, N), jnp.float32),
        compiler_params=pltpu.CompilerParams(
            dimension_semantics=("parallel", "parallel"),
            vmem_limit_bytes=_VMEM_LIMIT,
        ),
    )(x_flat, dre, dim)


# ----------------------------------------------------------------------------
# Fallback kernel (large H*W): magnitude + phase + concat after an XLA fft2.
# ----------------------------------------------------------------------------
def _magphase_kernel(re_ref, im_ref, out_ref):
    re = re_ref[...]                       # (RT, NT) lane-dense block
    im = im_ref[...]
    out_ref[0] = _magnitude(re, im)
    out_ref[1] = _atan2(im, re)


def _magphase_call(re, im):
    """re, im: (B*C, N) f32 -> (2, B*C, N) f32 stacked (magnitude, phase)."""
    R, N = re.shape
    RT, NT = _pick_tiles(R, N)
    grid = (pl.cdiv(R, RT), pl.cdiv(N, NT))
    in_spec = pl.BlockSpec((RT, NT), lambda r, t: (r, t))
    out_spec = pl.BlockSpec((2, RT, NT), lambda r, t: (0, r, t))
    return pl.pallas_call(
        _magphase_kernel,
        grid=grid,
        in_specs=[in_spec, in_spec],
        out_specs=out_spec,
        out_shape=jax.ShapeDtypeStruct((2, R, N), jnp.float32),
        compiler_params=pltpu.CompilerParams(
            dimension_semantics=("parallel", "parallel"),
            vmem_limit_bytes=_VMEM_LIMIT,
        ),
    )(re, im)


# ----------------------------------------------------------------------------
# 2-D DFT matrices on the flattened spatial axis (n = h*W + w, m = u*W + v).
# ----------------------------------------------------------------------------
@functools.lru_cache(maxsize=None)
def _dft2_matrices(H, W):
    N = H * W
    ang_h = -2.0 * np.pi * np.outer(np.arange(H), np.arange(H)) / H   # (H, H)
    ang_w = -2.0 * np.pi * np.outer(np.arange(W), np.arange(W)) / W   # (W, W)
    ang = ang_h[:, None, :, None] + ang_w[None, :, None, :]           # [h,w,u,v]
    ang = ang.reshape(N, N)                                           # [k=h*W+w, m=u*W+v]
    return np.cos(ang).astype(np.float32), np.sin(ang).astype(np.float32)


# ----------------------------------------------------------------------------
# FFTLayer forward.
# ----------------------------------------------------------------------------
def fft_layer(x, patch_grid_size):
    """x: (B, N, C) tokens, patch_grid_size = (H, W) with H*W == N.
    Returns (B, N, 2C) = feature2token(cat([|F|, angle(F)], dim=1))."""
    B, Ntok, C = x.shape
    H, W = patch_grid_size
    N = H * W
    assert N == Ntok
    x = x.astype(jnp.float32)

    # token2feature, flattened to rows: (B, N, C) -> (B*C, N)  (XLA permute)
    x_flat = jnp.transpose(x, (0, 2, 1)).reshape(B * C, N)

    if N <= _DFT_MATMUL_MAX_N:
        # fft2 fused into the Pallas kernel as two real MXU DFT matmuls.
        dre_np, dim_np = _dft2_matrices(H, W)
        mp = _dft_magphase_call(x_flat, jnp.asarray(dre_np), jnp.asarray(dim_np))
    else:
        # TODO(synk): no Pallas TPU FFT primitive; large grids keep the XLA fft2
        # custom call (a separable per-axis DFT-matmul would also avoid the
        # re/im materialization but needs batched middle-axis contractions).
        xf = jnp.fft.fft2(x_flat.reshape(B * C, H, W)).reshape(B * C, N)
        mp = _magphase_call(jnp.real(xf).astype(jnp.float32),
                            jnp.imag(xf).astype(jnp.float32))

    # cat([mag, phase], dim=1) + feature2token, folded into one XLA transpose:
    # (2, B, C, N) -> (B, N, 2, C) -> (B, N, 2C)
    return jnp.transpose(mp.reshape(2, B, C, N), (1, 3, 0, 2)).reshape(B, N, 2 * C)


if __name__ == "__main__":
    B, C, H, W = 2, 4, 16, 16
    N = H * W
    key = jax.random.PRNGKey(0)
    x = jax.random.uniform(key, (B, N, C), dtype=jnp.float32)

    fwd = jax.jit(fft_layer, static_argnums=1)
    out = fwd(x, (H, W))
    jax.block_until_ready(out)
    assert out.shape == (B, N, 2 * C), out.shape
    assert out.dtype == jnp.float32

    # ---- Check the fused DFT path against the XLA FFT reference. ----
    x_fea = jnp.transpose(x, (0, 2, 1)).reshape(B, C, H, W)
    ref = jnp.fft.fft2(x_fea).reshape(B, C, N)
    ref = jnp.transpose(ref, (0, 2, 1))                  # (B, N, C) complex
    mag, phase = out[..., :C], out[..., C:]
    rec = mag.astype(jnp.complex64) * jnp.exp(1j * phase.astype(jnp.complex64))
    scale = float(jnp.max(jnp.abs(ref))) + 1.0
    rec_err = float(jnp.max(jnp.abs(rec - ref))) / scale
    assert rec_err < 1e-2, rec_err
    mag_err = float(jnp.max(jnp.abs(mag - jnp.abs(ref)))) / scale
    assert mag_err < 1e-2, mag_err

    # ---- Also exercise the large-N fallback kernel (mag/phase only). ----
    xf = jnp.fft.fft2(x_fea).reshape(B * C, N)
    mp = jax.jit(_magphase_call)(jnp.real(xf).astype(jnp.float32),
                                 jnp.imag(xf).astype(jnp.float32))
    jax.block_until_ready(mp)
    assert jnp.allclose(mp[0], jnp.abs(xf), rtol=1e-5, atol=1e-4)
    # Phase compared modulo 2*pi (bins with an exactly-zero imaginary part can
    # legitimately land on +pi vs -pi).
    dphi = jnp.abs(mp[1] - jnp.angle(xf))
    dphi = jnp.minimum(dphi, 2.0 * _PI - dphi)
    assert float(jnp.max(dphi)) < 1e-4, float(jnp.max(dphi))

    print("KERNEL_OK")
</pallas_src>

<mosaic_0001>
module attributes {stable_mosaic.version = 11 : i64} {
  func.func @_dft_magphase_kernel(%arg0: i32, %arg1: i32, %arg2: memref<8x256xf32, #tpu.memory_space<vmem>>, %arg3: memref<256x128xf32, #tpu.memory_space<vmem>>, %arg4: memref<256x128xf32, #tpu.memory_space<vmem>>, %arg5: memref<2x8x128xf32, #tpu.memory_space<vmem>>) attributes {dimension_semantics = [#tpu.dimension_semantics<parallel>, #tpu.dimension_semantics<parallel>], iteration_bounds = array<i64: 1, 2>, scalar_prefetch = 0 : i64, scratch_operands = 0 : i64, tpu.core_type = #tpu.core_type<tc>, window_params = [{transform_indices = @transform_0, window_bounds = array<i64: 8, 256>}, {transform_indices = @transform_1, window_bounds = array<i64: 256, 128>}, {transform_indices = @transform_2, window_bounds = array<i64: 256, 128>}, {transform_indices = @transform_3, window_bounds = array<i64: 2, 8, 128>}]} {
    %c0 = arith.constant 0 : index
    %c0_0 = arith.constant 0 : index
    %0 = vector.load %arg2[%c0, %c0_0] : memref<8x256xf32, #tpu.memory_space<vmem>>, vector<8x256xf32>
    %c0_1 = arith.constant 0 : index
    %c0_2 = arith.constant 0 : index
    %1 = vector.load %arg3[%c0_1, %c0_2] : memref<256x128xf32, #tpu.memory_space<vmem>>, vector<256x128xf32>
    %cst = arith.constant dense<0.000000e+00> : vector<8x128xf32>
    %2 = tpu.matmul %0, %1, %cst {dimension_numbers = #tpu.dot_dimension_numbers<[1], [0], [0], [1], [0, 0, 1, 1], [], []>} : vector<8x256xf32>, vector<256x128xf32>, vector<8x128xf32> -> vector<8x128xf32>
    %c0_3 = arith.constant 0 : index
    %c0_4 = arith.constant 0 : index
    %3 = vector.load %arg4[%c0_3, %c0_4] : memref<256x128xf32, #tpu.memory_space<vmem>>, vector<256x128xf32>
    %cst_5 = arith.constant dense<0.000000e+00> : vector<8x128xf32>
    %4 = tpu.matmul %0, %3, %cst_5 {dimension_numbers = #tpu.dot_dimension_numbers<[1], [0], [0], [1], [0, 0, 1, 1], [], []>} : vector<8x256xf32>, vector<256x128xf32>, vector<8x128xf32> -> vector<8x128xf32>
    %5 = arith.mulf %2, %2 : vector<8x128xf32>
    %6 = arith.mulf %4, %4 : vector<8x128xf32>
    %7 = arith.addf %5, %6 : vector<8x128xf32>
    %cst_6 = arith.constant 9.99999991E-38 : f32
    %8 = vector.broadcast %cst_6 : f32 to vector<8x128xf32>
    %9 = arith.cmpf olt, %7, %8 : vector<8x128xf32>
    %cst_7 = arith.constant 1.000000e+00 : f32
    %10 = vector.broadcast %cst_7 : f32 to vector<8x128xf32>
    %11 = arith.select %9, %10, %7 : vector<8x128xi1>, vector<8x128xf32>
    %cst_8 = arith.constant 9.99999991E-38 : f32
    %12 = vector.broadcast %cst_8 : f32 to vector<8x128xf32>
    %13 = arith.cmpf olt, %7, %12 : vector<8x128xf32>
    %14 = math.rsqrt %11 : vector<8x128xf32>
    %15 = arith.mulf %7, %14 : vector<8x128xf32>
    %cst_9 = arith.constant 0.000000e+00 : f32
    %16 = vector.broadcast %cst_9 : f32 to vector<8x128xf32>
    %17 = arith.select %13, %16, %15 : vector<8x128xi1>, vector<8x128xf32>
    %c0_10 = arith.constant 0 : index
    %c0_11 = arith.constant 0 : index
    %c0_12 = arith.constant 0 : index
    %18 = vector.load %arg5[%c0_10, %c0_11, %c0_12] : memref<2x8x128xf32, #tpu.memory_space<vmem>>, vector<1x8x128xf32>
    %19 = vector.shape_cast %18 : vector<1x8x128xf32> to vector<8x128xf32>
    %20 = vector.shape_cast %17 : vector<8x128xf32> to vector<1x8x128xf32>
    tpu.vector_store %arg5[%c0_10, %c0_11, %c0_12], %20 {strides = array<i32>} : memref<2x8x128xf32, #tpu.memory_space<vmem>>, vector<1x8x128xf32>,
    %21 = math.absf %4 : vector<8x128xf32>
    %22 = math.absf %2 : vector<8x128xf32>
    %23 = arith.maximumf %22, %21 : vector<8x128xf32>
    %24 = arith.minimumf %22, %21 : vector<8x128xf32>
    %cst_13 = arith.constant 9.99999991E-38 : f32
    %25 = vector.broadcast %cst_13 : f32 to vector<8x128xf32>
    %26 = arith.cmpf olt, %23, %25 : vector<8x128xf32>
    %cst_14 = arith.constant 1.000000e+00 : f32
    %27 = vector.broadcast %cst_14 : f32 to vector<8x128xf32>
    %28 = arith.select %26, %27, %23 : vector<8x128xi1>, vector<8x128xf32>
    %29 = tpu.reciprocal %28 {approx = true} : vector<8x128xf32> -> vector<8x128xf32>
    %30 = arith.mulf %28, %29 : vector<8x128xf32>
    %cst_15 = arith.constant 2.000000e+00 : f32
    %31 = vector.broadcast %cst_15 : f32 to vector<8x128xf32>
    %32 = arith.subf %31, %30 : vector<8x128xf32>
    %33 = arith.mulf %29, %32 : vector<8x128xf32>
    %34 = arith.mulf %24, %33 : vector<8x128xf32>
    %35 = arith.mulf %34, %34 : vector<8x128xf32>
    %cst_16 = arith.constant 0.00282363896 : f32
    %36 = vector.broadcast %cst_16 : f32 to vector<8x128xf32>
    %37 = arith.mulf %36, %35 : vector<8x128xf32>
    %cst_17 = arith.constant 0.0159569029 : f32
    %38 = vector.broadcast %cst_17 : f32 to vector<8x128xf32>
    %39 = arith.subf %37, %38 : vector<8x128xf32>
    %40 = arith.mulf %39, %35 : vector<8x128xf32>
    %cst_18 = arith.constant 0.0425049886 : f32
    %41 = vector.broadcast %cst_18 : f32 to vector<8x128xf32>
    %42 = arith.addf %40, %41 : vector<8x128xf32>
    %43 = arith.mulf %42, %35 : vector<8x128xf32>
    %cst_19 = arith.constant 0.074890092 : f32
    %44 = vector.broadcast %cst_19 : f32 to vector<8x128xf32>
    %45 = arith.subf %43, %44 : vector<8x128xf32>
    %46 = arith.mulf %45, %35 : vector<8x128xf32>
    %cst_20 = arith.constant 0.106347933 : f32
    %47 = vector.broadcast %cst_20 : f32 to vector<8x128xf32>
    %48 = arith.addf %46, %47 : vector<8x128xf32>
    %49 = arith.mulf %48, %35 : vector<8x128xf32>
    %cst_21 = arith.constant 0.142027363 : f32
    %50 = vector.broadcast %cst_21 : f32 to vector<8x128xf32>
    %51 = arith.subf %49, %50 : vector<8x128xf32>
    %52 = arith.mulf %51, %35 : vector<8x128xf32>
    %cst_22 = arith.constant 0.199926957 : f32
    %53 = vector.broadcast %cst_22 : f32 to vector<8x128xf32>
    %54 = arith.addf %52, %53 : vector<8x128xf32>
    %55 = arith.mulf %54, %35 : vector<8x128xf32>
    %cst_23 = arith.constant 0.333331019 : f32
    %56 = vector.broadcast %cst_23 : f32 to vector<8x128xf32>
    %57 = arith.subf %55, %56 : vector<8x128xf32>
    %58 = arith.mulf %35, %57 : vector<8x128xf32>
    %59 = arith.mulf %34, %58 : vector<8x128xf32>
    %60 = arith.addf %34, %59 : vector<8x128xf32>
    %61 = arith.cmpf ogt, %21, %22 : vector<8x128xf32>
    %cst_24 = arith.constant 1.57079637 : f32
    %62 = vector.broadcast %cst_24 : f32 to vector<8x128xf32>
    %63 = arith.subf %62, %60 : vector<8x128xf32>
    %64 = arith.select %61, %63, %60 : vector<8x128xi1>, vector<8x128xf32>
    %cst_25 = arith.constant 0.000000e+00 : f32
    %65 = vector.broadcast %cst_25 : f32 to vector<8x128xf32>
    %66 = arith.cmpf olt, %2, %65 : vector<8x128xf32>
    %cst_26 = arith.constant 3.14159274 : f32
    %67 = vector.broadcast %cst_26 : f32 to vector<8x128xf32>
    %68 = arith.subf %67, %64 : vector<8x128xf32>
    %69 = arith.select %66, %68, %64 : vector<8x128xi1>, vector<8x128xf32>
    %cst_27 = arith.constant 0.000000e+00 : f32
    %70 = vector.broadcast %cst_27 : f32 to vector<8x128xf32>
    %71 = arith.cmpf olt, %4, %70 : vector<8x128xf32>
    %cst_28 = arith.constant 0.000000e+00 : f32
    %72 = vector.broadcast %cst_28 : f32 to vector<8x128xf32>
    %73 = arith.subf %72, %69 : vector<8x128xf32>
    %74 = arith.select %71, %73, %69 : vector<8x128xi1>, vector<8x128xf32>
    %c1 = arith.constant 1 : index
    %c0_29 = arith.constant 0 : index
    %c0_30 = arith.constant 0 : index
    %75 = vector.load %arg5[%c1, %c0_29, %c0_30] : memref<2x8x128xf32, #tpu.memory_space<vmem>>, vector<1x8x128xf32>
    %76 = vector.shape_cast %75 : vector<1x8x128xf32> to vector<8x128xf32>
    %77 = vector.shape_cast %74 : vector<8x128xf32> to vector<1x8x128xf32>
    tpu.vector_store %arg5[%c1, %c0_29, %c0_30], %77 {strides = array<i32>} : memref<2x8x128xf32, #tpu.memory_space<vmem>>, vector<1x8x128xf32>,
    return
  }
  func.func @transform_0(%arg0: i32, %arg1: i32) -> (i32, i32) {
    %c0_i32 = arith.constant 0 : i32
    %c0_i32_0 = arith.constant 0 : i32
    return %arg0, %c0_i32 : i32, i32
  }
  func.func @transform_1(%arg0: i32, %arg1: i32) -> (i32, i32) {
    %c0_i32 = arith.constant 0 : i32
    %c0_i32_0 = arith.constant 0 : i32
    return %c0_i32, %arg1 : i32, i32
  }
  func.func @transform_2(%arg0: i32, %arg1: i32) -> (i32, i32) {
    %c0_i32 = arith.constant 0 : i32
    %c0_i32_0 = arith.constant 0 : i32
    return %c0_i32, %arg1 : i32, i32
  }
  func.func @transform_3(%arg0: i32, %arg1: i32) -> (i32, i32, i32) {
    %c0_i32 = arith.constant 0 : i32
    %c0_i32_0 = arith.constant 0 : i32
    return %c0_i32, %arg0, %arg1 : i32, i32, i32
  }
}

</mosaic_0001>

<bundles_post_ra>
// kernel: fft_layer.1
= control target key start
LH: loop header
LB: loop body
LE: loop exit
PB: predicated region body
PF: predicated region fallthrough
CT: control target
= control target key end

     0   :  { %8 = vsyncpa [#allocation3], 0  ;;  %s1311_s0 = inlined_call_operand.vmem [shape: f32[8,256], index: 0, kind: input, shape index: {}]   ;;  %s1312_s1 = inlined_call_operand.hbm [shape: f32[256,256], index: 1, kind: input, shape index: {}]   ;;  %s1313_s2 = inlined_call_operand.hbm [shape: f32[256,256], index: 2, kind: input, shape index: {}]   ;;  %s1314_s3 = inlined_call_operand.vmem [shape: f32[2,8,256], index: 3, kind: output, shape index: {}]  }
   0x1   :  { %10 = vsyncpa [#allocation3 + $0x1], 0 }
   0x2   :  { %11 = vsyncpa [#allocation5], 0 }
   0x3   :  { %13 = vsyncpa [#allocation5 + $0x1], 0  ;;  %s1033_s12 = smov 0   ;;  %s1035_s13 = smov 0  }
   0x4   :  { %s1037_s14 = smov 0   ;;  %s1039_s15 = smov 0  }
   0x5   :  { %s1041_s16 = smov 0   ;;  %s1043_s17 = smov 0  }
   0x6 LB: > { %s669_s18 = sadd.s32 4294967295, %s1006_s17   ;;  %s28_s19 = sadd.s32 1, %s1002_s16  ;;  %s1006_s17 = sphi %s1043_s17, %s19_s17   ;;  %s1002_s16 = sphi %s1041_s16, %s1328_s16   ;;  %s998_s15 = sphi %s1039_s15, %s1327_s15   ;;  %s994_s14 = sphi %s1037_s14, %s1326_s14   ;;  %s990_s13 = sphi %s1035_s13, %s1325_s13   ;;  %s986_s12 = sphi %s1033_s12, %s1324_s12  }
   0x7   : > { %p29_p0 = scmp.ge.s32.totalorder %s28_s19, 2  ;;  %s64_s20 = sadd.s32 1, %s994_s14 }
   0x8   : > { %p71_p1 = scmp.ne.s32.totalorder %s994_s14, %s990_s13  ;;  %p72_p2 = scmp.eq.s32.totalorder %s1006_s17, 0 }
   0x9   : > { %s1330_s19 = smov (%p29_p0, %s28_s19), 0  ;;  %p77_p4 = scmp.ne.s32.totalorder %s990_s13, %s986_s12 }
   0xa   : > { %p1069_p3 = por %p72_p2, %p71_p1  ;;  %s61_s22 = ssub.s32 %s1002_s16, %s1330_s19 }
   0xb   : > { %p78_p5 = scmp.eq.s32.totalorder %s669_s18, 0  ;;  %p62_p6 = scmp.eq.s32.totalorder %s61_s22, 0 }
   0xc   : > { %p129_p7 = scmp.eq.s32.totalorder %s669_s18, 1  ;;  %p836_p10 = scmp.lt.s32.totalorder %s1006_s17, 2 }
   0xd   : > { %p1076_p8 = por %p78_p5, %p77_p4  ;;  %s1089_s26 = sand.u32 1, %s994_s14  }
   0xe   : > { %s1081_s24 = scalar_select %p62_p6, %s994_s14, %s64_s20  }
   0xf   : > { %s1317_s23 = scalar_select %p1076_p8, 1, 0 }
  0x10   : > { %p1083_p9 = por %p129_p7, %p71_p1  ;;  %s675_s27 = sshll.u32 %s1002_s16, 7 }
  0x11   : > { %s674_s28 = sshll.u32 %s1089_s26, 8  ;;  %s1098_s4 = scalar_lea.hbm %s1312_s1, %s675_s27 }
  0x12   : > { %s1318_s25 = scalar_select %p1083_p9, 1, 0 }
  0x13   : > { %s167_s5 = scalar_lea.vmem [#allocation2], %s674_s28  ;;  %p1104_p11 = pnand %p836_p10, %p1069_p3 }
  0x14   : > { %s173_s6 = sshll.u32 %s167_s5, 4  ;;  %s164_s8 = scalar_lea.sflag [#allocation3], %s1089_s26  ;;  %s1108_s6 = int_to_ptr.vmem [resolvable:$true] %s173_s6 }
  0x15   : > { %s892_s9 = scalar_lea.hbm %s1098_s4, 4096  ;;  %p894_p0 = pneg %p1104_p11 }
  0x16   : > { %p893_p13 = scmp.ne.s32.totalorder %s1098_s4, %s892_s9  ;;  %s897_s12 = scalar_lea.hbm %s1312_s1, 8192 }
  0x17   : > { %p898_p3 = scmp.lt.u32.totalorder %s1098_s4, %s1312_s1  ;;  %p899_p4 = scmp.lt.u32.totalorder %s897_s12, %s892_s9 }
  0x18   : > { %p895_p1 = pnand %p894_p0, %p893_p13  ;;  %p901_p6 = scmp.lt.u32.totalorder %s892_s9, %s1098_s4 }
  0x19   : > { %p900_p5 = por %p899_p4, %p898_p3 }
  0x1a   : > { %p896_p2 = pneg %p895_p1 }
  0x1b   : > { %p902_p7 = por %p901_p6, %p900_p5 }
  0x1d   : > { %p903_p10 = pnand %p902_p7, %p896_p2 }
  0x1f   : > { %906 = shalt.err (!%p903_p10)
}
  0x20   : > { %s907_s21 = scalar_lea.vmem %s1108_s6, 4096  ;;  %s1008_s22 = smov [#allocation2]  }
  0x21   : > { %p908_p13 = scmp.ne.s32.totalorder %s1108_s6, %s907_s21  ;;  %s912_s29 = sshll.u32 %s1008_s22, 4  ;;  %s913_s29 = int_to_ptr.vmem [resolvable:$false] %s912_s29 }
  0x22   : > { %s914_s30 = scalar_lea.vmem %s913_s29, 8192  ;;  %p915_p9 = scmp.lt.s32.totalorder %s1108_s6, %s913_s29 }
  0x23   : > { %p910_p1 = pnand %p908_p13, %p894_p0  ;;  %p916_p3 = scmp.lt.s32.totalorder %s914_s30, %s907_s21 }
  0x25   : > { %p911_p12 = pneg %p910_p1  ;;  %p917_p4 = por %p916_p3, %p915_p9 }
  0x27   : > { %p918_p5 = pnand %p917_p4, %p911_p12 }
  0x29   : > { %921 = shalt.err (!%p918_p5)
}
  0x2a   : > { %s1009_s5 = smov 256   ;;  %s1010_s9 = smov 128  }
  0x2b   : > { %s1011_s10 = smov 8   ;;  %p201_p9 = scmp.lt.s32.totalorder %s1006_s17, 3 }
  0x2c   : > { %832 = dma.hbm_to_vmem [thread:$0]  (!%p1104_p11), %s1098_s4, 4096, %s1108_s6, %s164_s8, %s1009_s5, %s1010_s9, %s1011_s10  }
  0x2d   : > { %s1148_s18 = scalar_lea.hbm %s1313_s2, %s675_s27  ;;  %p1320_p12 = scmp.ge.s32.totalorder %s1006_s17, 1 }
  0x2e   : > { %s187_s21 = scalar_lea.vmem [#allocation4], %s674_s28  ;;  %s184_s4 = scalar_lea.sflag [#allocation5], %s1089_s26 }
  0x2f   : > { %p1152_p2 = pnand %p1320_p12, %p201_p9  ;;  %s193_s22 = sshll.u32 %s187_s21, 4  ;;  %s1158_s22 = int_to_ptr.vmem [resolvable:$true] %s193_s22 }
  0x30   : > { %s922_s6 = scalar_lea.hbm %s1148_s18, 4096  ;;  %s927_s29 = scalar_lea.hbm %s1313_s2, 8192 }
  0x31   : > { %p923_p6 = scmp.ne.s32.totalorder %s1148_s18, %s922_s6  ;;  %p928_p13 = scmp.lt.u32.totalorder %s1148_s18, %s1313_s2 }
  0x32   : > { %p929_p1 = scmp.lt.u32.totalorder %s927_s29, %s922_s6  ;;  %p931_p4 = scmp.lt.u32.totalorder %s922_s6, %s1148_s18 }
  0x33   : > { %p925_p7 = pnand %p923_p6, %p894_p0 }
  0x34   : > { %p930_p3 = por %p929_p1, %p928_p13 }
  0x35   : > { %p926_p10 = pneg %p925_p7 }
  0x36   : > { %p932_p5 = por %p931_p4, %p930_p3 }
  0x38   : > { %p933_p9 = pnand %p932_p5, %p926_p10 }
  0x3a   : > { %936 = shalt.err (!%p933_p9)
}
  0x3b   : > { %s937_s28 = scalar_lea.vmem %s1158_s22, 4096  ;;  %s1012_s12 = smov [#allocation4]  }
  0x3c   : > { %p938_p12 = scmp.ne.s32.totalorder %s1158_s22, %s937_s28  ;;  %s942_s21 = sshll.u32 %s1012_s12, 4  ;;  %s943_s21 = int_to_ptr.vmem [resolvable:$false] %s942_s21 }
  0x3d   : > { %s944_s27 = scalar_lea.vmem %s943_s21, 8192  ;;  %p945_p8 = scmp.lt.s32.totalorder %s1158_s22, %s943_s21 }
  0x3e   : > { %p940_p6 = pnand %p938_p12, %p894_p0  ;;  %p946_p13 = scmp.lt.s32.totalorder %s944_s27, %s937_s28 }
  0x40   : > { %p941_p7 = pneg %p940_p6  ;;  %p947_p1 = por %p946_p13, %p945_p8 }
  0x42   : > { %p948_p3 = pnand %p947_p1, %p941_p7 }
  0x44   : > { %951 = shalt.err (!%p948_p3)
}
  0x45   : > { %835 = dma.hbm_to_vmem [thread:$0]  (!%p1104_p11), %s1148_s18, 4096, %s1158_s22, %s184_s4, %s1009_s5, %s1010_s9, %s1011_s10  }
  0x46   : > { %205 = sbr.rel (%p1152_p2) target bundleno = 412 (0x19c), region = 32  ;;  %s1192_s6 = sand.u32 (!%p1152_p2), 1, %s990_s13  }
  0x47   : > { %s679_s8 = sshll.u32 (!%p1152_p2), %s1192_s6, 8  ;;  %s208_s29 = scalar_lea.sflag (!%p1152_p2), [#allocation3], %s1192_s6 }
  0x48   : > { %s1196_s7 = scalar_lea.vmem (!%p1152_p2), [#allocation2], %s679_s8  ;;  %p1322_p8 = scmp.ne.s32.totalorder (!%p1152_p2), %s1317_s23, 0 }
  0x4d   : > { %977 = dma.done.wait (%p1322_p8), %s208_s29, 4096  }
  0x4e   : > { %979 = vsyncadd (%p1322_p8), %s208_s29, 4294963200  ;;  %s217_s26 = scalar_lea.sflag [#allocation5], %s1192_s6  ;;  %s1203_s5 = scalar_lea.vmem [#allocation4], %s679_s8 }
  0x4f   : > { %981 = dma.done.wait (%p1322_p8), %s217_s26, 4096  }
  0x50   : > { %983 = vsyncadd (%p1322_p8), %s217_s26, 4294963200  ;;  %v275_v0 = vld [vmem:[%s1196_s7 + $0x80] sm:$0xff]  ;;  %v276_v1 = vld [vmem:[%s1196_s7 + $0x88] sm:$0xff]  ;;  %s681_s20 = sshll.u32 %s1192_s6, 4  ;;  %p1323_p11 = scmp.ne.s32.totalorder %s1318_s25, 0 }
  0x51   : > { %v377_v2 = vld [vmem:[%s1203_s5 + $0x80] sm:$0xff]  ;;  %v761_v3 = vpack.c.bf16 %v276_v1, %v275_v0  ;;  %v378_v4 = vld [vmem:[%s1203_s5 + $0x88] sm:$0xff]  ;;  %v277_v11 = vld [vmem:[%s1196_s7 + $0x90] sm:$0xff]  ;;  %s1280_s22 = scalar_lea.vmem [#allocation6], %s681_s20  ;;  %s688_s4 = sshll.u32 (%p1323_p11), %s998_s15, 3 }
  0x52   : > { %v259_v5 = vld [vmem:[%s1196_s7] sm:$0xff]  ;;  %v260_v6 = vld [vmem:[%s1196_s7 + $0x8] sm:$0xff]  ;;  %v793_v7 = vpack.c.bf16 %v378_v4, %v377_v2  ;;  %v278_v13 = vld [vmem:[%s1196_s7 + $0x98] sm:$0xff]  ;;  %s522_s28 = scalar_lea.vmem (%p1323_p11), %s1314_s3, %s688_s4 }
  0x53   : > { %v763_v8 = vpack.c.bf16 %v260_v6, %v259_v5  ;;  %v361_v9 = vld [vmem:[%s1203_s5] sm:$0xff]  ;;  %v362_v10 = vld [vmem:[%s1203_s5 + $0x8] sm:$0xff]  ;;  %762 = vmatprep.subr.bf16.mxu0 %v761_v3  ;;  %v379_v14 = vld [vmem:[%s1203_s5 + $0x90] sm:$0xff]  ;;  %v765_v16 = vpack.c.bf16 %v278_v13, %v277_v11 }
  0x54   : > { %v795_v12 = vpack.c.bf16 %v362_v10, %v361_v9  ;;  %v380_v15 = vld [vmem:[%s1203_s5 + $0x98] sm:$0xff]  ;;  %794 = vmatprep.subr.bf16.mxu1 %v793_v7  ;;  %v261_v18 = vld [vmem:[%s1196_s7 + $0x10] sm:$0xff]  ;;  %v279_v23 = vld [vmem:[%s1196_s7 + $0xa0] sm:$0xff] }
  0x55   : > { %764 = vmatpush3.bf16.msra.mxu0 %v763_v8  ;;  %v797_v17 = vpack.c.bf16 %v380_v15, %v379_v14  ;;  %v262_v19 = vld [vmem:[%s1196_s7 + $0x18] sm:$0xff]  ;;  %v363_v20 = vld [vmem:[%s1203_s5 + $0x10] sm:$0xff]  ;;  %v280_v24 = vld [vmem:[%s1196_s7 + $0xa8] sm:$0xff] }
  0x56   : > { %796 = vmatpush3.bf16.msra.mxu1 %v795_v12  ;;  %v767_v21 = vpack.c.bf16 %v262_v19, %v261_v18  ;;  %v364_v22 = vld [vmem:[%s1203_s5 + $0x18] sm:$0xff]  ;;  %766 = vmatprep.subr.bf16.mxu0 %v765_v16  ;;  %v769_v26 = vpack.c.bf16 %v280_v24, %v279_v23  ;;  %v381_v27 = vld [vmem:[%s1203_s5 + $0xa0] sm:$0xff]  ;;  %v382_v28 = vld [vmem:[%s1203_s5 + $0xa8] sm:$0xff] }
  0x57   : > { %798 = vmatprep.subr.bf16.mxu1 %v797_v17  ;;  %v799_v25 = vpack.c.bf16 %v364_v22, %v363_v20  ;;  %v263_v29 = vld [vmem:[%s1196_s7 + $0x20] sm:$0xff]  ;;  %v801_v30 = vpack.c.bf16 %v382_v28, %v381_v27  ;;  %v264_v31 = vld [vmem:[%s1196_s7 + $0x28] sm:$0xff]  ;;  %v281_v35 = vld [vmem:[%s1196_s7 + $0xb0] sm:$0xff] }
  0x58   : > { %v365_v32 = vld [vmem:[%s1203_s5 + $0x20] sm:$0xff]  ;;  %v366_v33 = vld [vmem:[%s1203_s5 + $0x28] sm:$0xff]  ;;  %v771_v34 = vpack.c.bf16 %v264_v31, %v263_v29  ;;  %v282_v36 = vld [vmem:[%s1196_s7 + $0xb8] sm:$0xff] }
  0x59   : > { %768 = vmatpush3.bf16.msra.mxu0 %v767_v21  ;;  %v383_v37 = vld [vmem:[%s1203_s5 + $0xb0] sm:$0xff]  ;;  %v803_v38 = vpack.c.bf16 %v366_v33, %v365_v32  ;;  %v773_v39 = vpack.c.bf16 %v282_v36, %v281_v35  ;;  %v384_v40 = vld [vmem:[%s1203_s5 + $0xb8] sm:$0xff]  ;;  %v283_v46 = vld [vmem:[%s1196_s7 + $0xc0] sm:$0xff] }
  0x5a   : > { %800 = vmatpush3.bf16.msra.mxu1 %v799_v25  ;;  %770 = vmatprep.subr.bf16.mxu0 %v769_v26  ;;  %v265_v41 = vld [vmem:[%s1196_s7 + $0x30] sm:$0xff]  ;;  %v266_v42 = vld [vmem:[%s1196_s7 + $0x38] sm:$0xff]  ;;  %v805_v43 = vpack.c.bf16 %v384_v40, %v383_v37  ;;  %v284_v47 = vld [vmem:[%s1196_s7 + $0xc8] sm:$0xff] }
  0x5b   : > { %802 = vmatprep.subr.bf16.mxu1 %v801_v30  ;;  %v367_v44 = vld [vmem:[%s1203_s5 + $0x30] sm:$0xff]  ;;  %v368_v45 = vld [vmem:[%s1203_s5 + $0x38] sm:$0xff]  ;;  %v385_v48 = vld [vmem:[%s1203_s5 + $0xc0] sm:$0xff]  ;;  %v775_v50 = vpack.c.bf16 %v266_v42, %v265_v41  ;;  %v777_v52 = vpack.c.bf16 %v284_v47, %v283_v46 }
  0x5c   : > { %v386_v49 = vld [vmem:[%s1203_s5 + $0xc8] sm:$0xff]  ;;  %v807_v51 = vpack.c.bf16 %v368_v45, %v367_v44  ;;  %v267_v53 = vld [vmem:[%s1196_s7 + $0x40] sm:$0xff]  ;;  %v285_v58 = vld [vmem:[%s1196_s7 + $0xd0] sm:$0xff] }
  0x5d   : > { %772 = vmatpush3.bf16.msra.mxu0 %v771_v34  ;;  %v268_v54 = vld [vmem:[%s1196_s7 + $0x48] sm:$0xff]  ;;  %v369_v55 = vld [vmem:[%s1203_s5 + $0x40] sm:$0xff]  ;;  %v809_v56 = vpack.c.bf16 %v386_v49, %v385_v48  ;;  %v286_v59 = vld [vmem:[%s1196_s7 + $0xd8] sm:$0xff] }
  0x5e   : > { %804 = vmatpush3.bf16.msra.mxu1 %v803_v38  ;;  %774 = vmatprep.subr.bf16.mxu0 %v773_v39  ;;  %v370_v57 = vld [vmem:[%s1203_s5 + $0x48] sm:$0xff]  ;;  %v387_v60 = vld [vmem:[%s1203_s5 + $0xd0] sm:$0xff]  ;;  %v388_v61 = vld [vmem:[%s1203_s5 + $0xd8] sm:$0xff]  ;;  %v779_v62 = vpack.c.bf16 %v268_v54, %v267_v53  ;;  %v781_v0 = vpack.c.bf16 %v286_v59, %v285_v58 }
  0x5f   : > { %806 = vmatprep.subr.bf16.mxu1 %v805_v43  ;;  %v811_v63 = vpack.c.bf16 %v370_v57, %v369_v55  ;;  %v269_v1 = vld [vmem:[%s1196_s7 + $0x50] sm:$0xff]  ;;  %v270_v2 = vld [vmem:[%s1196_s7 + $0x58] sm:$0xff]  ;;  %v813_v4 = vpack.c.bf16 %v388_v61, %v387_v60  ;;  %v287_v6 = vld [vmem:[%s1196_s7 + $0xe0] sm:$0xff] }
  0x60   : > { %v371_v3 = vld [vmem:[%s1203_s5 + $0x50] sm:$0xff]  ;;  %v372_v5 = vld [vmem:[%s1203_s5 + $0x58] sm:$0xff]  ;;  %v288_v7 = vld [vmem:[%s1196_s7 + $0xe8] sm:$0xff]  ;;  %v783_v10 = vpack.c.bf16 %v270_v2, %v269_v1 }
  0x61   : > { %776 = vmatpush3.bf16.msra.mxu0 %v775_v50  ;;  %v389_v8 = vld [vmem:[%s1203_s5 + $0xe0] sm:$0xff]  ;;  %v390_v9 = vld [vmem:[%s1203_s5 + $0xe8] sm:$0xff]  ;;  %v815_v12 = vpack.c.bf16 %v372_v5, %v371_v3  ;;  %v785_v13 = vpack.c.bf16 %v288_v7, %v287_v6  ;;  %v289_v19 = vld [vmem:[%s1196_s7 + $0xf0] sm:$0xff] }
  0x62   : > { %808 = vmatpush3.bf16.msra.mxu1 %v807_v51  ;;  %778 = vmatprep.subr.bf16.mxu0 %v777_v52  ;;  %v271_v11 = vld [vmem:[%s1196_s7 + $0x60] sm:$0xff]  ;;  %v272_v14 = vld [vmem:[%s1196_s7 + $0x68] sm:$0xff]  ;;  %v817_v17 = vpack.c.bf16 %v390_v9, %v389_v8  ;;  %v290_v20 = vld [vmem:[%s1196_s7 + $0xf8] sm:$0xff] }
  0x63   : > { %810 = vmatprep.subr.bf16.mxu1 %v809_v56  ;;  %v373_v15 = vld [vmem:[%s1203_s5 + $0x60] sm:$0xff]  ;;  %v258_v16 = vld [vmem:[%s1311_s0 + $0x8] sm:$0xff]  ;;  %v391_v21 = vld [vmem:[%s1203_s5 + $0xf0] sm:$0xff]  ;;  %v787_v23 = vpack.c.bf16 %v272_v14, %v271_v11  ;;  %v789_v25 = vpack.c.bf16 %v290_v20, %v289_v19 }
  0x64   : > { %v374_v18 = vld [vmem:[%s1203_s5 + $0x68] sm:$0xff]  ;;  %355 = vmatprep.mubr.f32.mxu0 %v258_v16  ;;  %v392_v22 = vld [vmem:[%s1203_s5 + $0xf8] sm:$0xff]  ;;  %457 = vmatprep.mubr.f32.mxu1 %v258_v16  ;;  %v273_v26 = vld [vmem:[%s1196_s7 + $0x70] sm:$0xff] }
  0x65   : > { %780 = vmatpush3.bf16.msra.mxu0 %v779_v62  ;;  %v819_v24 = vpack.c.bf16 %v374_v18, %v373_v15  ;;  %v274_v27 = vld [vmem:[%s1196_s7 + $0x78] sm:$0xff]  ;;  %v821_v28 = vpack.c.bf16 %v392_v22, %v391_v21  ;;  %v375_v29 = vld [vmem:[%s1203_s5 + $0x70] sm:$0xff]  ;;  %v257_v33 = vld [vmem:[%s1311_s0] sm:$0xff] }
  0x66   : > { %812 = vmatpush3.bf16.msra.mxu1 %v811_v63  ;;  %782 = vmatprep.subr.bf16.mxu0 %v781_v0  ;;  %v376_v30 = vld [vmem:[%s1203_s5 + $0x78] sm:$0xff]  ;;  %v791_v31 = vpack.c.bf16 %v274_v27, %v273_v26 }
  0x67   : > { %814 = vmatprep.subr.bf16.mxu1 %v813_v4  ;;  %v823_v32 = vpack.c.bf16 %v376_v30, %v375_v29 }
  0x69   : > { %784 = vmatpush3.bf16.msra.mxu0 %v783_v10 }
  0x6a   : > { %816 = vmatpush3.bf16.msra.mxu1 %v815_v12  ;;  %786 = vmatprep.subr.bf16.mxu0 %v785_v13 }
  0x6b   : > { %818 = vmatprep.subr.bf16.mxu1 %v817_v17 }
  0x6d   : > { %788 = vmatpush3.bf16.msra.mxu0 %v787_v23 }
  0x6e   : > { %820 = vmatpush3.bf16.msra.mxu1 %v819_v24  ;;  %790 = vmatprep.subr.bf16.mxu0 %v789_v25 }
  0x6f   : > { %822 = vmatprep.subr.bf16.mxu1 %v821_v28 }
  0x71   : > { %792 = vmatpush3.bf16.msra.mxu0 %v791_v31 }
  0x72   : > { %824 = vmatpush3.bf16.msra.mxu1 %v823_v32 }
  0x74   : > { %356 = vmatmul.mubr.f32.vlgmr.msra.gmra.mrb[0].mxu0 %v257_v33 }
  0x75   : > { %458 = vmatmul.mubr.f32.vlgmr.msra.gmra.mrb[0].mxu1 %v257_v33 }
 0x147   : > { %v723_v34 = vpop.f32.mrb[0].mxu0 }
 0x148   : > { %v758_v35 = vpop.f32.mrb[0].mxu1  ;;  %v724_v36 = vpop.f32.mrb[1].mxu0 }
 0x149   : > { %v725_v37 = vadd.f32 %v724_v36, %v723_v34  ;;  %v759_v38 = vpop.f32.mrb[1].mxu1 }
 0x14a   : > { %v760_v39 = vadd.f32 %v759_v38, %v758_v35 }
 0x14b   : > { %v463_v40 = vmul.f32 %v725_v37, %v725_v37  ;;  %v473_v41 = vand.u32 2147483647, %v725_v37  ;;  %vm504_vm3 = vcmp.lt.f32.partialorder %v725_v37, 0.0 }
 0x14c   : > { %v464_v42 = vmul.f32 %v760_v39, %v760_v39  ;;  %v472_v43 = vand.u32 2147483647, %v760_v39  ;;  %vm507_vm4 = vcmp.lt.f32.partialorder %v760_v39, 0.0 }
 0x14e   : > { %v465_v44 = vadd.f32 %v464_v42, %v463_v40  ;;  %v474_v45 = vmax.f32 %v473_v41, %v472_v43  ;;  %v475_v46 = vmin.f32 %v473_v41, %v472_v43  ;;  %vm501_vm0 = vcmp.gt.f32.partialorder %v472_v43, %v473_v41 }
 0x150   : > { %vm466_vm1 = vcmp.lt.f32.partialorder %v465_v44, 1e-37  ;;  %vm476_vm2 = vcmp.lt.f32.partialorder %v474_v45, 1e-37 }
 0x151   : > { %v467_v47 = vsel %vm466_vm1, 1.0, %v465_v44  ;;  %v477_v48 = vsel %vm476_vm2, 1.0, %v474_v45 }
 0x152   : > { %888 = vrsqrt.f32 %v467_v47 }
 0x153   : > { %890 = vrcp.f32 %v477_v48 }
 0x15c   : > { %v889_v49 = vpop.eup %888 }
 0x15d   : > { %v891_v50 = vpop.eup %890  ;;  %v469_v51 = vmul.f32 %v889_v49, %v465_v44 }
 0x15e   : > { %v479_v52 = vmul.f32 %v891_v50, %v477_v48 }
 0x15f   : > { %v470_v53 = vsel %vm466_vm1, 0.0, %v469_v51 }
 0x160   : > { %471 = vst [vmem:[%s1280_s22] sm:$0xff] %v470_v53  ;;  %v480_v54 = vsub.f32 2.0, %v479_v52 }
 0x162   : > { %v481_v55 = vmul.f32 %v891_v50, %v480_v54 }
 0x164   : > { %v482_v56 = vmul.f32 %v481_v55, %v475_v46 }
 0x166   : > { %v483_v57 = vmul.f32 %v482_v56, %v482_v56 }
 0x167   : > { %v552_v17 = vld [vmem:[%s1280_s22] sm:$0xff] (%p1323_p11) }
 0x168   : > { %v484_v58 = vmul.f32 0.002823639, %v483_v57  ;;  %553 = vst [vmem:[%s522_s28] sm:$0xff] (%p1323_p11), %v552_v17 }
 0x16a   : > { %v682_v59 = vadd.f32 -0.015956903, %v484_v58 }
 0x16c   : > { %v486_v60 = vmul.f32 %v682_v59, %v483_v57 }
 0x16e   : > { %v487_v61 = vadd.f32 0.04250499, %v486_v60 }
 0x170   : > { %v488_v62 = vmul.f32 %v487_v61, %v483_v57 }
 0x172   : > { %v683_v63 = vadd.f32 -0.07489009, %v488_v62 }
 0x174   : > { %v490_v0 = vmul.f32 %v683_v63, %v483_v57 }
 0x176   : > { %v491_v1 = vadd.f32 0.10634793, %v490_v0 }
 0x178   : > { %v492_v2 = vmul.f32 %v491_v1, %v483_v57 }
 0x17a   : > { %v684_v3 = vadd.f32 -0.14202736, %v492_v2 }
 0x17c   : > { %v494_v4 = vmul.f32 %v684_v3, %v483_v57 }
 0x17e   : > { %v495_v5 = vadd.f32 0.19992696, %v494_v4 }
 0x180   : > { %v496_v6 = vmul.f32 %v495_v5, %v483_v57 }
 0x182   : > { %v685_v7 = vadd.f32 -0.33333102, %v496_v6 }
 0x184   : > { %v498_v8 = vmul.f32 %v685_v7, %v483_v57 }
 0x186   : > { %v499_v9 = vmul.f32 %v498_v8, %v482_v56 }
 0x188   : > { %v500_v10 = vadd.f32 %v499_v9, %v482_v56 }
 0x18a   : > { %v502_v11 = vsub.f32 1.5707964, %v500_v10 }
 0x18c   : > { %v503_v12 = vsel %vm501_vm0, %v502_v11, %v500_v10 }
 0x18d   : > { %v505_v13 = vsub.f32 3.1415927, %v503_v12  ;;  %518 = sbr.rel (!%p1323_p11) target bundleno = 412 (0x19c), region = 44 }
 0x18f   : > { %v506_v14 = vsel %vm504_vm3, %v505_v13, %v503_v12 }
 0x190   : > { %v508_v15 = vsub.f32 0.0, %v506_v14 }
 0x192   : > { %v509_v16 = vsel %vm507_vm4, %v508_v15, %v506_v14 }
 0x193   : > { %686 = vst [vmem:[%s1280_s22 + $0x8] sm:$0xff] %v509_v16 }
 0x19a   : > { %v554_v18 = vld [vmem:[%s1280_s22 + $0x8] sm:$0xff] }
 0x19b   : > { %555 = vst [vmem:[%s522_s28 + $0x10] sm:$0xff] %v554_v18 }
 0x19c PF: > { %s19_s17 = sadd.s32 1, %s1006_s17   ;;  %s1324_s12 = smov %s990_s13 }
 0x19d   : > { %p16_p0 = scmp.ge.s32.totalorder %s19_s17, 4   ;;  %s1325_s13 = smov %s994_s14 }
 0x19e   : > { %s1326_s14 = smov %s1081_s24  ;;  %s1327_s15 = smov %s1002_s16 }
 0x19f   : > { %s1328_s16 = smov %s1330_s19  ;;  %18 = sbr.rel (!%p16_p0) target bundleno = 6 (0x6), region = 127 }
 0x1a6   :  { %571 = vsyncpa [#allocation3], 1 }
 0x1a7   :  { %573 = vsyncpa [#allocation3 + $0x1], 1 }
 0x1a8   :  { %574 = vsyncpa [#allocation5], 1 }
 0x1a9   :  { %576 = vsyncpa [#allocation5 + $0x1], 1 }

</bundles_post_ra>
